<compile_context>
chip_gen: v7x
topology: tpu7x:2x2x1
jax: 0.10.0
libtpu: 0.0.40
codegen_flags: <defaults>
</compile_context>

<pallas_src>
import functools
from collections import namedtuple

import jax
import jax.numpy as jnp
from jax.experimental import pallas as pl
from jax.experimental.pallas import tpu as pltpu

# ----------------------------- constants ------------------------------------
EMBED_DIM = 32                 # small stand-in for CLIP_EMBED_DIM (1024)
NUM_CELLS = 64                 # small stand-in for the geocell count
NUM_MULTI_TASK_VARIABLES = 6
NUM_CLIMATES = 28
NUM_MONTHS = 12
NUM_CANDIDATES = 5

REGRESSION_LOSS_SCALING = 8
CLIMATE_LOSS_SCALING = 2
MONTHS_LOSS_SCALING = 1


def _round_up(x, m):
    return (x + m - 1) // m * m


# The stacked-head layout is padded on a fixed 512-lane granularity so that
# every per-generation lane tile (TN in {256, 512}) divides both segments; the
# parameter layout is therefore identical on v5e / v6e / v7x.
PAD_GRAN = 512
N_OTHER = NUM_MULTI_TASK_VARIABLES + NUM_CLIMATES + NUM_MONTHS   # 46
NUM_CELLS_PAD = _round_up(NUM_CELLS, PAD_GRAN)                   # 512
N_OTHER_PAD = _round_up(N_OTHER, PAD_GRAN)                       # 512
N_PAD = NUM_CELLS_PAD + N_OTHER_PAD                              # 1024

# Column offsets of the non-geocell heads inside the padded stacked layout.
O_MT = NUM_CELLS_PAD
O_CLI = O_MT + NUM_MULTI_TASK_VARIABLES
O_MON = O_CLI + NUM_CLIMATES

NEG_INF = -1e30   # finite "-inf" bias for padded geocell lanes (exp -> 0)

ModelOutput = namedtuple(
    "ModelOutput",
    "loss loss_clf loss_reg loss_climate loss_month pred_LLH geocell_preds "
    "preds_mt preds_climate preds_month geocell_topk embedding",
)
MultiTaskPredictions = namedtuple(
    "MultiTaskPredictions",
    "loss_reg preds_mt loss_climate preds_climate loss_month preds_month",
)


# ----------------------------- tiling config ---------------------------------
def _tpu_generation():
    try:
        kind = jax.devices()[0].device_kind.lower()
    except Exception:
        return "other"
    if "v7" in kind:
        return "v7x"
    if "v6" in kind:
        return "v6e"
    if "v5e" in kind or "v5 lite" in kind or "v5lite" in kind:
        return "v5e"
    return "other"


def _tile_config(batch, embed_dim):
    """Per-generation (TB, TN, vmem_limit_bytes)."""
    gen = _tpu_generation()
    if gen == "v7x":
        # 64 MiB physical VMEM per TC, 32 MiB scoped default.
        tn, budget, vmem_limit = 512, 24 << 20, 44 << 20
    elif gen == "v6e":
        tn, budget, vmem_limit = 512, 64 << 20, 100 << 20
    elif gen == "v5e":
        # Scoped default is only 16 MiB -> raise the limit explicitly.
        tn, budget, vmem_limit = 256, 48 << 20, 100 << 20
    else:
        # Unknown chip (or interpret mode): stay inside default scoped VMEM.
        tn, budget, vmem_limit = 256, 12 << 20, None

    # bf16 sublane packing is (16, 128) -> round the batch tile to 16.
    b16 = _round_up(max(batch, 1), 16)

    # Largest TB (multiple of 16) whose working set fits `budget`:
    #   ~2 x (TB*D + TB*TN) bf16 (x tile + logits tile, double-buffered)
    # + ~2 x D*TN bf16 (weight tile, double-buffered) + ~1 MiB slack.
    fixed = 4 * embed_dim * tn + (1 << 20)
    tb_cap = max(16, ((budget - fixed) // (4 * (embed_dim + tn))) // 16 * 16)

    # v5e/v6e: whole batch as one tile so the stacked weights stream from HBM
    # exactly once.  v7x: >= 2 batch tiles so the "parallel" axis shards
    # across both TensorCores.
    if gen == "v7x":
        target = max(16, _round_up(-(-b16 // 2), 16))
    else:
        target = b16
    tb = min(target, tb_cap)
    return tb, tn, vmem_limit


# ----------------------------- Pallas kernel --------------------------------
def _heads_kernel(x_ref, w_ref, b_ref, lbl_ref,
                  logits_ref, lse_ref, picked_ref,
                  m_sc, l_sc, p_sc, *, tn, n_cell_tiles, n_tiles):
    """One (batch-tile, N-tile) step of the fused prediction heads.

    x_ref:      (TB, D)   bf16 embedding tile (resident across the N axis)
    w_ref:      (D, TN)   bf16 stacked [cells|mt|climate|month] weight tile
    b_ref:      (1, TN)   f32 stacked bias tile (padded geocell lanes = -1e30)
    lbl_ref:    (TB, 1)   int32 geocell label per row
    logits_ref: (TB, TN)  bf16 logits tile (lane-dense, unmasked stores)
    lse_ref:    (TB, 1)   f32 per-row log-sum-exp over the geocell logits
    picked_ref: (TB, 1)   f32 logit of the labelled geocell (exact CE)
    m_sc/l_sc/p_sc: (TB, 1) running max / sum / picked-logit scratch
    """
    ni = pl.program_id(1)

    logits = jnp.dot(x_ref[...], w_ref[...],
                     preferred_element_type=jnp.float32) + b_ref[...]
    # bf16 writeback halves the dominant HBM output stream.
    logits_ref[...] = logits.astype(logits_ref.dtype)

    @pl.when(ni == 0)
    def _():
        m_sc[...] = jnp.full_like(m_sc, -jnp.inf)
        l_sc[...] = jnp.zeros_like(l_sc)
        p_sc[...] = jnp.zeros_like(p_sc)

    # Online log-sum-exp + labelled-logit gather over the geocell tiles only.
    # Padded geocell lanes carry a -1e30 bias, so exp() underflows to 0.
    @pl.when(ni < n_cell_tiles)
    def _():
        m_new = jnp.maximum(m_sc[...], jnp.max(logits, axis=-1, keepdims=True))
        l_sc[...] = (l_sc[...] * jnp.exp(m_sc[...] - m_new)
                     + jnp.sum(jnp.exp(logits - m_new), axis=-1, keepdims=True))
        m_sc[...] = m_new
        # f32 gather of the labelled geocell logit (keeps CE exact despite the
        # bf16 logits output).  Each label hits exactly one tile.
        cols = jax.lax.broadcasted_iota(jnp.int32, logits.shape, 1) + ni * tn
        hit = cols == lbl_ref[...]
        p_sc[...] += jnp.sum(jnp.where(hit, logits, 0.0), axis=-1, keepdims=True)

    @pl.when(ni == n_tiles - 1)
    def _():
        lse_ref[...] = m_sc[...] + jnp.log(l_sc[...])
        picked_ref[...] = p_sc[...]


def fused_heads(embedding, labels_clf, w_all, b_all):
    """Fused heads kernel.

    Returns (logits [B, N_PAD] bf16, lse [B, 1] f32, picked [B, 1] f32).
    """
    B, D = embedding.shape
    TB, TN, vmem_limit = _tile_config(B, D)
    B_pad = _round_up(B, TB)

    n_cell_tiles = NUM_CELLS_PAD // TN
    n_tiles = N_PAD // TN
    n_b_tiles = B_pad // TB

    x = embedding.astype(jnp.bfloat16)
    lbl = labels_clf.astype(jnp.int32).reshape(B, 1)
    if B_pad != B:
        x = jnp.pad(x, ((0, B_pad - B), (0, 0)))
        lbl = jnp.pad(lbl, ((0, B_pad - B), (0, 0)))

    # Weights are re-streamed once per batch tile; logits are bf16.
    cost = pl.CostEstimate(
        flops=2 * B_pad * D * N_PAD,
        transcendentals=B_pad * (NUM_CELLS_PAD + 2 * n_cell_tiles + 1),
        bytes_accessed=(x.size * 2 + lbl.size * 4
                        + (w_all.size * 2 + b_all.size * 4) * n_b_tiles
                        + B_pad * N_PAD * 2 + 2 * B_pad * 4),
    )

    kernel = functools.partial(_heads_kernel, tn=TN,
                               n_cell_tiles=n_cell_tiles, n_tiles=n_tiles)

    compiler_kwargs = dict(dimension_semantics=("parallel", "arbitrary"))
    if vmem_limit is not None:
        compiler_kwargs["vmem_limit_bytes"] = vmem_limit

    logits, lse, picked = pl.pallas_call(
        kernel,
        out_shape=(
            jax.ShapeDtypeStruct((B_pad, N_PAD), jnp.bfloat16),
            jax.ShapeDtypeStruct((B_pad, 1), jnp.float32),
            jax.ShapeDtypeStruct((B_pad, 1), jnp.float32),
        ),
        grid_spec=pltpu.PrefetchScalarGridSpec(
            num_scalar_prefetch=0,
            grid=(n_b_tiles, n_tiles),
            in_specs=[
                pl.BlockSpec((TB, D), lambda bi, ni: (bi, 0)),   # embedding tile
                pl.BlockSpec((D, TN), lambda bi, ni: (0, ni)),   # stacked weights
                pl.BlockSpec((1, TN), lambda bi, ni: (0, ni)),   # stacked biases
                pl.BlockSpec((TB, 1), lambda bi, ni: (bi, 0)),   # geocell labels
            ],
            out_specs=(
                pl.BlockSpec((TB, TN), lambda bi, ni: (bi, ni)),  # all logits
                pl.BlockSpec((TB, 1), lambda bi, ni: (bi, 0)),    # geocell lse
                pl.BlockSpec((TB, 1), lambda bi, ni: (bi, 0)),    # picked logit
            ),
            scratch_shapes=[
                pltpu.VMEM((TB, 1), jnp.float32),   # running max
                pltpu.VMEM((TB, 1), jnp.float32),   # running sum
                pltpu.VMEM((TB, 1), jnp.float32),   # picked-logit accumulator
            ],
        ),
        compiler_params=pltpu.CompilerParams(**compiler_kwargs),
        cost_estimate=cost,
    )(x, w_all, b_all, lbl)

    return logits[:B], lse[:B], picked[:B]


# ----------------------------- model (glue) ----------------------------------
def _ce_with_int_labels(logits, labels):
    # torch.nn.CrossEntropyLoss(reduction='mean') with integer class labels
    logp = jax.nn.log_softmax(logits, axis=-1)
    picked = jnp.take_along_axis(logp, labels[:, None], axis=-1)[:, 0]
    return -jnp.mean(picked)


def _ce_with_prob_labels(logits, target_probs):
    # torch.nn.CrossEntropyLoss(reduction='mean') with float (probability) targets
    logp = jax.nn.log_softmax(logits, axis=-1)
    return -jnp.mean(jnp.sum(target_probs * logp, axis=-1))


def super_guessr_forward(params, embedding, labels_clf, labels_multi_task,
                         labels_climate, labels_month):
    """Forward pass matching SuperGuessr(base_model=None, multi_task=True, ...)."""
    # No base model, no panorama, no hierarchical attention, no heading:
    # layer_input == embedding == output.
    # TODO(synk): panorama/hierarchical self-attention and heading concat
    # branches are not implemented (disabled in this configuration).
    output = embedding

    # Hot path: all heads, geocell log-sum-exp and labelled-logit gather fused
    # in the Pallas kernel.
    logits_all, cell_lse, picked = fused_heads(
        output, labels_clf, params["w_all"], params["b_all"])

    logits = logits_all[:, :NUM_CELLS].astype(jnp.float32)               # geocells
    preds_mt = logits_all[:, O_MT:O_MT + NUM_MULTI_TASK_VARIABLES].astype(jnp.float32)
    preds_climate = logits_all[:, O_CLI:O_CLI + NUM_CLIMATES].astype(jnp.float32)
    preds_month = logits_all[:, O_MON:O_MON + NUM_MONTHS].astype(jnp.float32)

    # Multi-task losses (tiny tensors -> plain JAX)
    loss_reg = jnp.mean((preds_mt - labels_multi_task) ** 2) * REGRESSION_LOSS_SCALING
    loss_climate = _ce_with_prob_labels(
        preds_climate, labels_climate.astype(jnp.float32)) * CLIMATE_LOSS_SCALING
    loss_month = _ce_with_int_labels(preds_month, labels_month) * MONTHS_LOSS_SCALING
    mt = MultiTaskPredictions(loss_reg, preds_mt, loss_climate,
                              preds_climate, loss_month, preds_month)

    # Geocell prediction.  softmax is monotonic -> argmax/top-k indices come
    # straight from the logits; top-k probabilities are recovered from the
    # kernel's log-sum-exp without recomputing a softmax.
    geocell_preds = jnp.argmax(logits, axis=-1)
    pred_LLH = jnp.take(params["lla_geocells"], geocell_preds, axis=0)
    topk_logits, topk_idx = jax.lax.top_k(logits, NUM_CANDIDATES)
    geocell_topk = (jnp.exp(topk_logits - cell_lse), topk_idx)

    # Classification loss: CE = mean(lse - logit[label]); both terms are f32
    # from the kernel, so the bf16 logits writeback does not affect the loss.
    # TODO(synk): haversine label smoothing branch not implemented
    # (should_smooth_labels=False).
    loss_clf = jnp.mean(cell_lse - picked)
    loss = loss_clf + mt.loss_reg + mt.loss_climate + mt.loss_month

    return ModelOutput(loss, loss_clf, mt.loss_reg, mt.loss_climate, mt.loss_month,
                       pred_LLH, geocell_preds, mt.preds_mt, mt.preds_climate,
                       mt.preds_month, geocell_topk, embedding)


# ----------------------------- parameter init --------------------------------
def init_params(key):
    def linear_init(kw, kb, fan_in, fan_out):
        # Matches torch.nn.Linear default init: U(-1/sqrt(fan_in), 1/sqrt(fan_in))
        bound = 1.0 / float(fan_in) ** 0.5
        w = jax.random.uniform(kw, (fan_in, fan_out), jnp.float32, -bound, bound)
        b = jax.random.uniform(kb, (fan_out,), jnp.float32, -bound, bound)
        return w, b

    keys = jax.random.split(key, 10)
    w_cell, b_cell = linear_init(keys[0], keys[1], EMBED_DIM, NUM_CELLS)
    w_mt, b_mt = linear_init(keys[2], keys[3], EMBED_DIM, NUM_MULTI_TASK_VARIABLES)
    w_cli, b_cli = linear_init(keys[4], keys[5], EMBED_DIM, NUM_CLIMATES)
    w_mon, b_mon = linear_init(keys[6], keys[7], EMBED_DIM, NUM_MONTHS)

    cell_pad = NUM_CELLS_PAD - NUM_CELLS
    other_pad = N_OTHER_PAD - N_OTHER

    # Stacked, lane-padded head weights (bf16) and biases (f32).  Padded
    # geocell lanes: weight 0, bias -1e30 so exp() of their logits is 0.
    w_all = jnp.concatenate(
        [w_cell, jnp.zeros((EMBED_DIM, cell_pad), jnp.float32),
         w_mt, w_cli, w_mon, jnp.zeros((EMBED_DIM, other_pad), jnp.float32)],
        axis=1).astype(jnp.bfloat16)                                   # (D, N_PAD)
    b_all = jnp.concatenate(
        [b_cell, jnp.full((cell_pad,), NEG_INF, jnp.float32),
         b_mt, b_cli, b_mon, jnp.zeros((other_pad,), jnp.float32)]
    )[None, :].astype(jnp.float32)                                     # (1, N_PAD)

    # Deterministic synthetic geocell centroids (longitude, latitude) -- the
    # real module loads these from a CSV; here they are generated in-script.
    lon = jax.random.uniform(keys[8], (NUM_CELLS, 1), jnp.float32, -180.0, 180.0)
    lat = jax.random.uniform(keys[9], (NUM_CELLS, 1), jnp.float32, -90.0, 90.0)
    lla_geocells = jnp.concatenate([lon, lat], axis=1)                 # (NUM_CELLS, 2)

    return {"w_all": w_all, "b_all": b_all, "lla_geocells": lla_geocells}


# ----------------------------- main -------------------------------------------
if __name__ == "__main__":
    key = jax.random.PRNGKey(0)
    k_param, k_emb, k_clf, k_mt, k_cli, k_mon = jax.random.split(key, 6)

    B = 8
    params = init_params(k_param)

    embedding = jax.random.normal(k_emb, (B, EMBED_DIM), jnp.float32)
    labels_clf = jax.random.randint(k_clf, (B,), 0, NUM_CELLS, jnp.int32)
    labels_multi_task = jax.random.normal(k_mt, (B, NUM_MULTI_TASK_VARIABLES), jnp.float32)
    climate_idx = jax.random.randint(k_cli, (B,), 0, NUM_CLIMATES, jnp.int32)
    labels_climate = jax.nn.one_hot(climate_idx, NUM_CLIMATES, dtype=jnp.float32)
    labels_month = jax.random.randint(k_mon, (B,), 0, NUM_MONTHS, jnp.int32)

    fwd = jax.jit(super_guessr_forward)
    out = fwd(params, embedding, labels_clf, labels_multi_task,
              labels_climate, labels_month)
    jax.block_until_ready(out.loss)
    jax.block_until_ready(out.pred_LLH)
    jax.block_until_ready(out.geocell_topk)

    # Shape checks
    assert out.pred_LLH.shape == (B, 2)
    assert out.geocell_preds.shape == (B,)
    assert out.preds_mt.shape == (B, NUM_MULTI_TASK_VARIABLES)
    assert out.preds_climate.shape == (B, NUM_CLIMATES)
    assert out.preds_month.shape == (B, NUM_MONTHS)
    assert out.geocell_topk[0].shape == (B, NUM_CANDIDATES)
    assert out.geocell_topk[1].shape == (B, NUM_CANDIDATES)
    assert bool(jnp.isfinite(out.loss))
    # top-k values are probabilities of a valid distribution
    assert bool(jnp.all(out.geocell_topk[0] <= 1.0 + 1e-2))

    # Lightweight correctness check of the classification CE against a
    # pure-JAX reference built from the same bf16-cast inputs.
    x32 = embedding.astype(jnp.bfloat16).astype(jnp.float32)
    ref_logits = x32 @ params["w_all"].astype(jnp.float32) + params["b_all"]
    ref_cell = ref_logits[:, :NUM_CELLS]
    ref_lse = jax.nn.logsumexp(ref_cell, axis=-1, keepdims=True)
    ref_picked = jnp.take_along_axis(ref_cell, labels_clf[:, None], axis=-1)
    ref_loss_clf = jnp.mean(ref_lse - ref_picked)
    assert abs(float(out.loss_clf) - float(ref_loss_clf)) < 5e-3

    print("KERNEL_OK")
</pallas_src>

<mosaic_0001>
module attributes {stable_mosaic.version = 11 : i64} {
  func.func @_heads_kernel(%arg0: i32, %arg1: i32, %arg2: memref<16x32xbf16, #tpu.memory_space<vmem>>, %arg3: memref<32x256xbf16, #tpu.memory_space<vmem>>, %arg4: memref<1x256xf32, #tpu.memory_space<vmem>>, %arg5: memref<16x1xi32, #tpu.memory_space<vmem>>, %arg6: memref<16x256xbf16, #tpu.memory_space<vmem>>, %arg7: memref<16x1xf32, #tpu.memory_space<vmem>>, %arg8: memref<16x1xf32, #tpu.memory_space<vmem>>, %arg9: memref<16x1xf32, #tpu.memory_space<vmem>>, %arg10: memref<16x1xf32, #tpu.memory_space<vmem>>, %arg11: memref<16x1xf32, #tpu.memory_space<vmem>>) attributes {dimension_semantics = [#tpu.dimension_semantics<parallel>, #tpu.dimension_semantics<arbitrary>], iteration_bounds = array<i64: 1, 4>, scalar_prefetch = 0 : i64, scratch_operands = 3 : i64, tpu.core_type = #tpu.core_type<tc>, window_params = [{transform_indices = @transform_0, window_bounds = array<i64: 16, 32>}, {transform_indices = @transform_1, window_bounds = array<i64: 32, 256>}, {transform_indices = @transform_2, window_bounds = array<i64: 1, 256>}, {transform_indices = @transform_3, window_bounds = array<i64: 16, 1>}, {transform_indices = @transform_4, window_bounds = array<i64: 16, 256>}, {transform_indices = @transform_5, window_bounds = array<i64: 16, 1>}, {transform_indices = @transform_6, window_bounds = array<i64: 16, 1>}]} {
    %c0 = arith.constant 0 : index
    %c0_0 = arith.constant 0 : index
    %0 = vector.load %arg2[%c0, %c0_0] : memref<16x32xbf16, #tpu.memory_space<vmem>>, vector<16x32xbf16>
    %c0_1 = arith.constant 0 : index
    %c0_2 = arith.constant 0 : index
    %1 = vector.load %arg3[%c0_1, %c0_2] : memref<32x256xbf16, #tpu.memory_space<vmem>>, vector<32x256xbf16>
    %cst = arith.constant dense<0.000000e+00> : vector<16x256xf32>
    %2 = tpu.matmul %0, %1, %cst {dimension_numbers = #tpu.dot_dimension_numbers<[1], [0], [0], [1], [0, 0, 1, 1], [], []>} : vector<16x32xbf16>, vector<32x256xbf16>, vector<16x256xf32> -> vector<16x256xf32>
    %c0_3 = arith.constant 0 : index
    %c0_4 = arith.constant 0 : index
    %3 = vector.load %arg4[%c0_3, %c0_4] : memref<1x256xf32, #tpu.memory_space<vmem>>, vector<1x256xf32>
    %4 = vector.broadcast %3 : vector<1x256xf32> to vector<16x256xf32>
    %5 = arith.addf %2, %4 : vector<16x256xf32>
    %6 = arith.truncf %5 : vector<16x256xf32> to vector<16x256xbf16>
    %c0_5 = arith.constant 0 : index
    %c0_6 = arith.constant 0 : index
    %7 = vector.load %arg6[%c0_5, %c0_6] : memref<16x256xbf16, #tpu.memory_space<vmem>>, vector<16x256xbf16>
    tpu.vector_store %arg6[%c0_5, %c0_6], %6 {strides = array<i32>} : memref<16x256xbf16, #tpu.memory_space<vmem>>, vector<16x256xbf16>,
    %c0_i32 = arith.constant 0 : i32
    %8 = arith.cmpi eq, %arg1, %c0_i32 : i32
    %9 = arith.extui %8 : i1 to i32
    %c0_i32_7 = arith.constant 0 : i32
    %10 = arith.cmpi ne, %9, %c0_i32_7 : i32
    scf.if %10 {
      %cst_10 = arith.constant 0xFF800000 : f32
      %17 = vector.broadcast %cst_10 : f32 to vector<16x1xf32>
      %c0_11 = arith.constant 0 : index
      %c0_12 = arith.constant 0 : index
      %18 = vector.load %arg9[%c0_11, %c0_12] : memref<16x1xf32, #tpu.memory_space<vmem>>, vector<16x1xf32>
      tpu.vector_store %arg9[%c0_11, %c0_12], %17 {strides = array<i32>} : memref<16x1xf32, #tpu.memory_space<vmem>>, vector<16x1xf32>,
      %cst_13 = arith.constant 0.000000e+00 : f32
      %19 = vector.broadcast %cst_13 : f32 to vector<16x1xf32>
      %c0_14 = arith.constant 0 : index
      %c0_15 = arith.constant 0 : index
      %20 = vector.load %arg10[%c0_14, %c0_15] : memref<16x1xf32, #tpu.memory_space<vmem>>, vector<16x1xf32>
      tpu.vector_store %arg10[%c0_14, %c0_15], %19 {strides = array<i32>} : memref<16x1xf32, #tpu.memory_space<vmem>>, vector<16x1xf32>,
      %cst_16 = arith.constant 0.000000e+00 : f32
      %21 = vector.broadcast %cst_16 : f32 to vector<16x1xf32>
      %c0_17 = arith.constant 0 : index
      %c0_18 = arith.constant 0 : index
      %22 = vector.load %arg11[%c0_17, %c0_18] : memref<16x1xf32, #tpu.memory_space<vmem>>, vector<16x1xf32>
      tpu.vector_store %arg11[%c0_17, %c0_18], %21 {strides = array<i32>} : memref<16x1xf32, #tpu.memory_space<vmem>>, vector<16x1xf32>,
    } else {
    }
    %c2_i32 = arith.constant 2 : i32
    %11 = arith.cmpi slt, %arg1, %c2_i32 : i32
    %12 = arith.extui %11 : i1 to i32
    %c0_i32_8 = arith.constant 0 : i32
    %13 = arith.cmpi ne, %12, %c0_i32_8 : i32
    scf.if %13 {
      %c0_10 = arith.constant 0 : index
      %c0_11 = arith.constant 0 : index
      %17 = vector.load %arg9[%c0_10, %c0_11] : memref<16x1xf32, #tpu.memory_space<vmem>>, vector<16x1xf32>
      %cst_12 = arith.constant dense<0xFF800000> : vector<16xf32>
      %18 = vector.multi_reduction <maximumf>, %5, %cst_12 [1] : vector<16x256xf32> to vector<16xf32>
      %19 = vector.shape_cast %18 : vector<16xf32> to vector<16x1xf32>
      %20 = arith.maximumf %17, %19 : vector<16x1xf32>
      %c0_13 = arith.constant 0 : index
      %c0_14 = arith.constant 0 : index
      %21 = vector.load %arg10[%c0_13, %c0_14] : memref<16x1xf32, #tpu.memory_space<vmem>>, vector<16x1xf32>
      %c0_15 = arith.constant 0 : index
      %c0_16 = arith.constant 0 : index
      %22 = vector.load %arg9[%c0_15, %c0_16] : memref<16x1xf32, #tpu.memory_space<vmem>>, vector<16x1xf32>
      %23 = arith.subf %22, %20 : vector<16x1xf32>
      %24 = math.exp %23 : vector<16x1xf32>
      %25 = arith.mulf %21, %24 : vector<16x1xf32>
      %26 = vector.broadcast %20 : vector<16x1xf32> to vector<16x256xf32>
      %27 = arith.subf %5, %26 : vector<16x256xf32>
      %28 = math.exp %27 : vector<16x256xf32>
      %cst_17 = arith.constant dense<0.000000e+00> : vector<16xf32>
      %29 = vector.multi_reduction <add>, %28, %cst_17 [1] : vector<16x256xf32> to vector<16xf32>
      %30 = vector.shape_cast %29 : vector<16xf32> to vector<16x1xf32>
      %31 = arith.addf %25, %30 : vector<16x1xf32>
      %c0_18 = arith.constant 0 : index
      %c0_19 = arith.constant 0 : index
      %32 = vector.load %arg10[%c0_18, %c0_19] : memref<16x1xf32, #tpu.memory_space<vmem>>, vector<16x1xf32>
      tpu.vector_store %arg10[%c0_18, %c0_19], %31 {strides = array<i32>} : memref<16x1xf32, #tpu.memory_space<vmem>>, vector<16x1xf32>,
      %c0_20 = arith.constant 0 : index
      %c0_21 = arith.constant 0 : index
      %33 = vector.load %arg9[%c0_20, %c0_21] : memref<16x1xf32, #tpu.memory_space<vmem>>, vector<16x1xf32>
      tpu.vector_store %arg9[%c0_20, %c0_21], %20 {strides = array<i32>} : memref<16x1xf32, #tpu.memory_space<vmem>>, vector<16x1xf32>,
      %34 = tpu.iota {dimensions = array<i32: 1>} : vector<16x256xi32>
      %c256_i32 = arith.constant 256 : i32
      %35 = arith.muli %arg1, %c256_i32 : i32
      %36 = vector.broadcast %35 : i32 to vector<16x256xi32>
      %37 = arith.addi %34, %36 : vector<16x256xi32>
      %c0_22 = arith.constant 0 : index
      %c0_23 = arith.constant 0 : index
      %38 = vector.load %arg5[%c0_22, %c0_23] : memref<16x1xi32, #tpu.memory_space<vmem>>, vector<16x1xi32>
      %39 = vector.broadcast %38 : vector<16x1xi32> to vector<16x256xi32>
      %40 = arith.cmpi eq, %37, %39 : vector<16x256xi32>
      %c0_24 = arith.constant 0 : index
      %c0_25 = arith.constant 0 : index
      %41 = vector.load %arg11[%c0_24, %c0_25] : memref<16x1xf32, #tpu.memory_space<vmem>>, vector<16x1xf32>
      %cst_26 = arith.constant 0.000000e+00 : f32
      %42 = vector.broadcast %cst_26 : f32 to vector<16x256xf32>
      %43 = arith.select %40, %5, %42 : vector<16x256xi1>, vector<16x256xf32>
      %cst_27 = arith.constant dense<0.000000e+00> : vector<16xf32>
      %44 = vector.multi_reduction <add>, %43, %cst_27 [1] : vector<16x256xf32> to vector<16xf32>
      %45 = vector.shape_cast %44 : vector<16xf32> to vector<16x1xf32>
      %46 = arith.addf %41, %45 : vector<16x1xf32>
      %c0_28 = arith.constant 0 : index
      %c0_29 = arith.constant 0 : index
      %47 = vector.load %arg11[%c0_28, %c0_29] : memref<16x1xf32, #tpu.memory_space<vmem>>, vector<16x1xf32>
      tpu.vector_store %arg11[%c0_28, %c0_29], %46 {strides = array<i32>} : memref<16x1xf32, #tpu.memory_space<vmem>>, vector<16x1xf32>,
    } else {
    }
    %c3_i32 = arith.constant 3 : i32
    %14 = arith.cmpi eq, %arg1, %c3_i32 : i32
    %15 = arith.extui %14 : i1 to i32
    %c0_i32_9 = arith.constant 0 : i32
    %16 = arith.cmpi ne, %15, %c0_i32_9 : i32
    scf.if %16 {
      %c0_10 = arith.constant 0 : index
      %c0_11 = arith.constant 0 : index
      %17 = vector.load %arg9[%c0_10, %c0_11] : memref<16x1xf32, #tpu.memory_space<vmem>>, vector<16x1xf32>
      %c0_12 = arith.constant 0 : index
      %c0_13 = arith.constant 0 : index
      %18 = vector.load %arg10[%c0_12, %c0_13] : memref<16x1xf32, #tpu.memory_space<vmem>>, vector<16x1xf32>
      %19 = math.log %18 : vector<16x1xf32>
      %20 = arith.addf %17, %19 : vector<16x1xf32>
      %c0_14 = arith.constant 0 : index
      %c0_15 = arith.constant 0 : index
      %21 = vector.load %arg7[%c0_14, %c0_15] : memref<16x1xf32, #tpu.memory_space<vmem>>, vector<16x1xf32>
      tpu.vector_store %arg7[%c0_14, %c0_15], %20 {strides = array<i32>} : memref<16x1xf32, #tpu.memory_space<vmem>>, vector<16x1xf32>,
      %c0_16 = arith.constant 0 : index
      %c0_17 = arith.constant 0 : index
      %22 = vector.load %arg11[%c0_16, %c0_17] : memref<16x1xf32, #tpu.memory_space<vmem>>, vector<16x1xf32>
      %c0_18 = arith.constant 0 : index
      %c0_19 = arith.constant 0 : index
      %23 = vector.load %arg8[%c0_18, %c0_19] : memref<16x1xf32, #tpu.memory_space<vmem>>, vector<16x1xf32>
      tpu.vector_store %arg8[%c0_18, %c0_19], %22 {strides = array<i32>} : memref<16x1xf32, #tpu.memory_space<vmem>>, vector<16x1xf32>,
    } else {
    }
    return
  }
  func.func @transform_0(%arg0: i32, %arg1: i32) -> (i32, i32) {
    %c0_i32 = arith.constant 0 : i32
    %c0_i32_0 = arith.constant 0 : i32
    return %arg0, %c0_i32 : i32, i32
  }
  func.func @transform_1(%arg0: i32, %arg1: i32) -> (i32, i32) {
    %c0_i32 = arith.constant 0 : i32
    %c0_i32_0 = arith.constant 0 : i32
    return %c0_i32, %arg1 : i32, i32
  }
  func.func @transform_2(%arg0: i32, %arg1: i32) -> (i32, i32) {
    %c0_i32 = arith.constant 0 : i32
    %c0_i32_0 = arith.constant 0 : i32
    return %c0_i32, %arg1 : i32, i32
  }
  func.func @transform_3(%arg0: i32, %arg1: i32) -> (i32, i32) {
    %c0_i32 = arith.constant 0 : i32
    %c0_i32_0 = arith.constant 0 : i32
    return %arg0, %c0_i32 : i32, i32
  }
  func.func @transform_4(%arg0: i32, %arg1: i32) -> (i32, i32) {
    %c0_i32 = arith.constant 0 : i32
    return %arg0, %arg1 : i32, i32
  }
  func.func @transform_5(%arg0: i32, %arg1: i32) -> (i32, i32) {
    %c0_i32 = arith.constant 0 : i32
    %c0_i32_0 = arith.constant 0 : i32
    return %arg0, %c0_i32 : i32, i32
  }
  func.func @transform_6(%arg0: i32, %arg1: i32) -> (i32, i32) {
    %c0_i32 = arith.constant 0 : i32
    %c0_i32_0 = arith.constant 0 : i32
    return %arg0, %c0_i32 : i32, i32
  }
}

</mosaic_0001>

<bundles_post_ra>
// kernel: super_guessr_forward.1
= control target key start
LH: loop header
LB: loop body
LE: loop exit
PB: predicated region body
PF: predicated region fallthrough
CT: control target
= control target key end

     0   :  { %12 = vsyncpa [#allocation6], 0  ;;  %s1282_s0 = inlined_call_operand.vmem [shape: bf16[16,32], index: 0, kind: input, shape index: {}]   ;;  %s1283_s1 = inlined_call_operand.hbm [shape: bf16[32,1024], index: 1, kind: input, shape index: {}]   ;;  %s1284_s2 = inlined_call_operand.vmem [shape: f32[1,1024], index: 2, kind: input, shape index: {}]   ;;  %s1285_s3 = inlined_call_operand.vmem [shape: s32[16,1], index: 3, kind: input, shape index: {}]   ;;  %s1286_s4 = inlined_call_operand.vmem [shape: bf16[16,1024], index: 4, kind: output, shape index: {0}]   ;;  %s1287_s5 = inlined_call_operand.vmem [shape: f32[16,1], index: 5, kind: output, shape index: {1}]   ;;  %s1288_s6 = inlined_call_operand.vmem [shape: f32[16,1], index: 6, kind: output, shape index: {2}]  }
   0x1   :  { %14 = vsyncpa [#allocation6 + $0x1], 0  ;;  %s1077_s21 = smov 0   ;;  %s1079_s22 = smov 0  }
   0x2   :  { %s1081_s23 = smov 0   ;;  %s1083_s24 = smov 0  }
   0x3   :  { %s1085_s25 = smov 0   ;;  %s1087_s26 = smov 0  }
   0x4 LB: > { %s827_s27 = sadd.s32 4294967295, %s1032_s26   ;;  %s29_s28 = sadd.s32 1, %s1028_s25  ;;  %s1032_s26 = sphi %s1087_s26, %s20_s26   ;;  %s1028_s25 = sphi %s1085_s25, %s1299_s25   ;;  %s1024_s24 = sphi %s1083_s24, %s1298_s24   ;;  %s1020_s23 = sphi %s1081_s23, %s1297_s23   ;;  %s1016_s22 = sphi %s1079_s22, %s1296_s22   ;;  %s1012_s21 = sphi %s1077_s21, %s1295_s21  }
   0x5   : > { %p30_p0 = scmp.ge.s32.totalorder %s29_s28, 4  ;;  %s65_s29 = sadd.s32 1, %s1020_s23 }
   0x6   : > { %p72_p1 = scmp.ne.s32.totalorder %s1020_s23, %s1016_s22  ;;  %p73_p2 = scmp.eq.s32.totalorder %s1032_s26, 0 }
   0x7   : > { %s1301_s28 = smov (%p30_p0, %s29_s28), 0  ;;  %p78_p4 = scmp.ne.s32.totalorder %s1016_s22, %s1012_s21 }
   0x8   : > { %p1113_p3 = por %p73_p2, %p72_p1  ;;  %s62_s7 = ssub.s32 %s1028_s25, %s1301_s28 }
   0x9   : > { %p79_p5 = scmp.eq.s32.totalorder %s827_s27, 0  ;;  %p63_p6 = scmp.eq.s32.totalorder %s62_s7, 0 }
   0xa   : > { %p156_p7 = scmp.eq.s32.totalorder %s827_s27, 3  ;;  %p871_p10 = scmp.lt.s32.totalorder %s1032_s26, 4 }
   0xb   : > { %p1120_p8 = por %p79_p5, %p78_p4  ;;  %s252_s11 = sand.u32 1, %s1020_s23  }
   0xc   : > { %s1125_s9 = scalar_select %p63_p6, %s1020_s23, %s65_s29  }
   0xd   : > { %p1127_p9 = por %p156_p7, %p72_p1  ;;  %s861_s12 = sshll.u32 %s1028_s25, 7 }
   0xe   : > { %s833_s13 = sshll.u32 %s252_s11, 5  ;;  %s1137_s16 = scalar_lea.hbm %s1283_s1, %s861_s12 }
   0xf   : > { %s1291_s10 = scalar_select %p1127_p9, 1, 0 }
  0x10   : > { %s256_s17 = scalar_lea.vmem [#allocation5], %s833_s13  ;;  %p1141_p11 = pnand %p871_p10, %p1113_p3 }
  0x11   : > { %s263_s18 = sshll.u32 %s256_s17, 4  ;;  %s1148_s20 = scalar_lea.sflag [#allocation6], %s252_s11  ;;  %s1145_s18 = int_to_ptr.vmem [resolvable:$true] %s263_s18 }
  0x12   : > { %s952_s21 = scalar_lea.hbm %s1137_s16, 512  ;;  %p954_p0 = pneg %p1141_p11 }
  0x13   : > { %p953_p13 = scmp.ne.s32.totalorder %s1137_s16, %s952_s21  ;;  %s957_s30 = scalar_lea.hbm %s1283_s1, 2048 }
  0x14   : > { %p958_p3 = scmp.lt.u32.totalorder %s1137_s16, %s1283_s1  ;;  %p959_p4 = scmp.lt.u32.totalorder %s957_s30, %s952_s21 }
  0x15   : > { %p955_p1 = pnand %p954_p0, %p953_p13  ;;  %p961_p6 = scmp.lt.u32.totalorder %s952_s21, %s1137_s16 }
  0x16   : > { %p960_p5 = por %p959_p4, %p958_p3 }
  0x17   : > { %p956_p2 = pneg %p955_p1 }
  0x18   : > { %p962_p7 = por %p961_p6, %p960_p5 }
  0x1a   : > { %p963_p10 = pnand %p962_p7, %p956_p2 }
  0x1c   : > { %966 = shalt.err (!%p963_p10)
}
  0x1d   : > { %s967_s11 = scalar_lea.vmem %s1145_s18, 512  ;;  %s1034_s13 = smov [#allocation5]  }
  0x1e   : > { %p968_p13 = scmp.ne.s32.totalorder %s1145_s18, %s967_s11  ;;  %s972_s14 = sshll.u32 %s1034_s13, 4  ;;  %s973_s14 = int_to_ptr.vmem [resolvable:$false] %s972_s14 }
  0x1f   : > { %s974_s15 = scalar_lea.vmem %s973_s14, 1024  ;;  %p975_p9 = scmp.lt.s32.totalorder %s1145_s18, %s973_s14 }
  0x20   : > { %p970_p1 = pnand %p968_p13, %p954_p0  ;;  %p976_p3 = scmp.lt.s32.totalorder %s974_s15, %s967_s11 }
  0x22   : > { %p971_p12 = pneg %p970_p1  ;;  %p977_p4 = por %p976_p3, %p975_p9 }
  0x24   : > { %p978_p5 = pnand %p977_p4, %p971_p12 }
  0x26   : > { %981 = shalt.err (!%p978_p5)
}
  0x27   : > { %s1035_s17 = smov 512   ;;  %s1036_s21 = smov 128  }
  0x28   : > { %s1037_s27 = smov 8   ;;  %p279_p0 = scmp.lt.s32.totalorder %s1032_s26, 5 }
  0x29   : > { %870 = dma.hbm_to_vmem [thread:$0]  (!%p1141_p11), %s1137_s16, 512, %s1145_s18, %s1148_s20, %s1035_s17, %s1036_s21, %s1037_s27  }
  0x2a   : > { %p1293_p2 = scmp.ge.s32.totalorder %s1032_s26, 1 }
  0x2c   : > { %p280_p6 = pnand %p1293_p2, %p279_p0 }
  0x2d   : > { %s1180_s29 = sand.u32 (!%p280_p6), 1, %s1016_s22  }
  0x2e   : > { %283 = sbr.rel (%p280_p6) target bundleno = 757 (0x2f5), region = 36  ;;  %s837_s30 = sshll.u32 (!%p280_p6), %s1180_s29, 5 }
  0x2f   : > { %s286_s7 = scalar_lea.sflag (!%p280_p6), [#allocation6], %s1180_s29  ;;  %s289_s12 = scalar_lea.vmem (!%p280_p6), [#allocation5], %s837_s30 }
  0x35   : > { %1007 = dma.done.wait (%p1120_p8), %s286_s7, 512  }
  0x36   : > { %1009 = vsyncadd (%p1120_p8), %s286_s7, 4294966784  ;;  %v1038_v0 = vmov 0   ;;  %v927_v1 = vld [vmem:[%s289_s12 + $0x4] ss:$8 sps:$4 sm:$0xff]   ;;  %v929_v2 = vld [vmem:[%s289_s12] ss:$8 sps:$4 sm:$0xff]   ;;  %v382_v6 = vlaneseq }
  0x37   : > { %453 = vmatprep.mubr.bf16.mxu0 %v1038_v0  ;;  %421 = vmatprep.subr.bf16.mxu0 %v927_v1  ;;  %v930_v3 = vld [vmem:[%s289_s12 + $0x14] ss:$8 sps:$4 sm:$0xff]   ;;  %v932_v4 = vld [vmem:[%s289_s12 + $0x10] ss:$8 sps:$4 sm:$0xff]   ;;  %vm417_vm0 = vcmask 261120   ;;  %s839_s8 = sshll.u32 %s1024_s24, 1 }
  0x38   : > { %422 = vmatpush1.bf16.msra.mxu0 %v929_v2  ;;  %v933_v5 = vld [vmem:[%s1282_s0] sm:$0xff]   ;;  %p349_p8 = scmp.lt.s32.totalorder %s839_s8, 7  ;;  %v383_v7 = vshrl.u32 %v382_v6, 7  ;;  %s838_s13 = sshll.u32 %s1180_s29, 4 }
  0x39   : > { %423 = vmatprep.subr.bf16.mxu0 %v930_v3  ;;  %s1206_s14 = scalar_lea.vmem [#allocation7], %s838_s13  ;;  %p848_p9 = scmp.ne.s32.totalorder %s1024_s24, 0 }
  0x3a   : > { %s1303_s8 = smov (!%p349_p8, %s839_s8), 7  ;;  %v384_v8 = vsub.s32 0, %v383_v7  ;;  %v388_v10 = vsub.s32 1, %v383_v7  ;;  %vm482_vm1 = vcmask (!%p848_p9), 7168   ;;  %v1039_v23 = vmov (!%p848_p9), -inf  }
  0x3b   : > { %s351_s11 = scalar_lea.vmem %s1284_s2, %s1303_s8  ;;  %483 = vst.msk [vmem:[#allocation2] sm:$0xff] (!%p848_p9), %vm482_vm1, %v1039_v23  ;;  %484 = vst.msk [vmem:[#allocation2 + $0x8] sm:$0xff] (!%p848_p9), %vm482_vm1, %v1039_v23  ;;  %v1040_v24 = vmov (!%p848_p9), 0.0  }
  0x3c   : > { %424 = vmatpush1.bf16.msra.mxu0 %v932_v4  ;;  %v380_v9 = vld [vmem:[%s351_s11] sm:$0x3]  ;;  %485 = vst.msk [vmem:[#allocation3] sm:$0xff] (!%p848_p9), %vm482_vm1, %v1040_v24  ;;  %486 = vst.msk [vmem:[#allocation3 + $0x8] sm:$0xff] (!%p848_p9), %vm482_vm1, %v1040_v24 }
  0x3d   : > { %v385_v11 = vrot.slane %v380_v9, %v384_v8  ;;  %v389_v12 = vrot.slane %v380_v9, %v388_v10  ;;  %487 = vst.msk [vmem:[#allocation4] sm:$0xff] (!%p848_p9), %vm482_vm1, %v1040_v24  ;;  %488 = vst.msk [vmem:[#allocation4 + $0x8] sm:$0xff] (!%p848_p9), %vm482_vm1, %v1040_v24 }
  0x3f   : > { %845 = vmatmul.mubr.msk.bf16.vlgmr.msra.gmra.mrb[0].mxu0 %vm417_vm0, %v933_v5 }
 0x112   : > { %v455_v13 = vpop.f32.mrb[0].mxu0 }
 0x113   : > { %v1196_v14 = vadd.f32 %v455_v13, %v385_v11  ;;  %v457_v15 = vpop.f32.mrb[1].mxu0 }
 0x114   : > { %v1198_v16 = vadd.f32 %v457_v15, %v389_v12  ;;  %v459_v17 = vpop.f32.mrb[2].mxu0  ;;  %481 = sbr.rel (%p848_p9) target bundleno = 283 (0x11b), region = 44 }
 0x115   : > { %v1200_v18 = vadd.f32 %v459_v17, %v385_v11  ;;  %v461_v19 = vpop.f32.mrb[3].mxu0 }
 0x116   : > { %v862_v20 = vpack.c.bf16 %v1198_v16, %v1196_v14  ;;  %v1204_v21 = vadd.f32 %v461_v19, %v389_v12 }
 0x118   : > { %476 = vst [vmem:[%s1206_s14] sm:$0xff] %v862_v20  ;;  %v863_v22 = vpack.c.bf16 %v1204_v21, %v1200_v18 }
 0x11a   : > { %477 = vst [vmem:[%s1206_s14 + $0x8] sm:$0xff] %v863_v22 }
 0x11b PF: > { %p849_p11 = scmp.ge.s32.totalorder %s1024_s24, 2 }
 0x11c   : > { %v495_v25 = vmax.f32 (!%p849_p11), %v1196_v14, %v1198_v16  ;;  %v498_v26 = vmax.f32 (!%p849_p11), %v1200_v18, %v1204_v21  ;;  %v1041_v27 = vmov (!%p849_p11), 0   ;;  %v555_v28 = vld [vmem:[%s1285_s3] sm:$0xff] (!%p849_p11)  ;;  %vm543_vm2 = vcmask (!%p849_p11), 7168   ;;  %v494_v32 = vld [vmem:[#allocation2 + $0x8] sm:$0xff] (!%p849_p11)  ;;  %s850_s29 = sshll.u32 (!%p849_p11), %s1024_s24, 8  ;;  %v503_v9 = vld [vmem:[#allocation3] sm:$0xff] (!%p849_p11) }
 0x11d   : > { %492 = sbr.rel (%p849_p11) target bundleno = 729 (0x2d9), region = 48  ;;  %934 = vset.pattern.permute.xlu1 (!%p849_p11), %v1041_v27  ;;  %935 = vset.pattern.permute.xlu0 (!%p849_p11), %v1041_v27  ;;  %v493_v29 = vld [vmem:[#allocation2] sm:$0xff] (!%p849_p11)  ;;  %v556_v37 = vld [vmem:[%s1285_s3 + $0x8] sm:$0xff] (!%p849_p11)  ;;  %v549_v38 = vand.u32 (!%p849_p11), 127, %v382_v6  ;;  %v552_v40 = vstv (!%p849_p11), %s850_s29  ;;  %v504_v13 = vld [vmem:[#allocation3 + $0x8] sm:$0xff] (!%p849_p11) }
 0x11e   : > { %496 = vmax.xlane.f32.xlu0 (!%p849_p11), %v495_v25  ;;  %v567_v3 = vld [vmem:[#allocation4] sm:$0xff] (!%p849_p11) }
 0x11f   : > { %v550_v39 = vadd.s32 (!%p849_p11), 128, %v549_v38  ;;  %v553_v41 = vadd.s32 (!%p849_p11), %v552_v40, %v549_v38 }
 0x121   : > { %v554_v42 = vadd.s32 (!%p849_p11), %v552_v40, %v550_v39 }
 0x122   : > { %499 = vmax.xlane.f32.xlu0 (!%p849_p11), %v498_v26 }
 0x138   : > { %558 = vperm.xlu0 %935, %v555_v28  }
 0x1ab   : > { %v497_v30 = vpop.xlane.xlu0 %496 }
 0x1ac   : > { %v501_v31 = vmax.f32 %v493_v29, %v497_v30 }
 0x1ae   : > { %v505_v33 = vsub.f32 %v493_v29, %v501_v31  ;;  %546 = vst.msk [vmem:[#allocation2] sm:$0xff] %vm543_vm2, %v501_v31  ;;  %515 = vperm.xlu1 %934, %v501_v31  }
 0x1af   : > { %v500_v34 = vpop.xlane.xlu0 %499 }
 0x1b0   : > { %v502_v35 = vmax.f32 %v494_v32, %v500_v34  ;;  %v507_v6 = vmul.f32 1.442695, %v505_v33 }
 0x1b2   : > { %v506_v36 = vsub.f32 %v494_v32, %v502_v35  ;;  %547 = vst.msk [vmem:[#allocation2 + $0x8] sm:$0xff] %vm543_vm2, %v502_v35  ;;  %520 = vperm.xlu1 %934, %v502_v35  }
 0x1b4   : > { %v509_v7 = vmul.f32 1.442695, %v506_v36 }
 0x1b6   : > { %561 = vperm.xlu1 %934, %v556_v37  }
 0x1b7   : > { %v559_v43 = vpop.permute.xlu0 %558 }
 0x1b8   : > { %vm563_vm3 = vcmp.eq.s32.totalorder %v553_v41, %v559_v43  ;;  %vm564_vm4 = vcmp.eq.s32.totalorder %v554_v42, %v559_v43 }
 0x1b9   : > { %v569_v44 = vsel %vm563_vm3, %v1196_v14, 0.0  ;;  %v570_v45 = vsel %vm564_vm4, %v1198_v16, 0.0 }
 0x1ba   : > { %v573_v46 = vadd.f32 %v570_v45, %v569_v44 }
 0x1bc   : > { %574 = vadd.xlane.f32.xlu0 %v573_v46 }
 0x22d   : > { %v516_v47 = vpop.permute.xlu1 %515 }
 0x22e   : > { %v523_v48 = vsub.f32 %v1196_v14, %v516_v47  ;;  %v524_v49 = vsub.f32 %v1198_v16, %v516_v47 }
 0x230   : > { %v527_v50 = vmul.f32 1.442695, %v523_v48  ;;  %v529_v51 = vmul.f32 1.442695, %v524_v49 }
 0x231   : > { %v521_v52 = vpop.permute.xlu1 %520 }
 0x232   : > { %936 = vpow2.f32 %v527_v50  ;;  %v525_v53 = vsub.f32 %v1200_v18, %v521_v52  ;;  %v526_v54 = vsub.f32 %v1204_v21, %v521_v52 }
 0x233   : > { %938 = vpow2.f32 %v529_v51 }
 0x234   : > { %v531_v55 = vmul.f32 1.442695, %v525_v53  ;;  %v533_v56 = vmul.f32 1.442695, %v526_v54 }
 0x235   : > { %v562_v59 = vpop.permute.xlu1 %561 }
 0x236   : > { %940 = vpow2.f32 %v531_v55  ;;  %vm565_vm5 = vcmp.eq.s32.totalorder %v553_v41, %v562_v59  ;;  %vm566_vm6 = vcmp.eq.s32.totalorder %v554_v42, %v562_v59 }
 0x237   : > { %942 = vpow2.f32 %v533_v56  ;;  %v571_v0 = vsel %vm565_vm5, %v1200_v18, 0.0  ;;  %v572_v1 = vsel %vm566_vm6, %v1204_v21, 0.0  ;;  %v568_v18 = vld [vmem:[#allocation4 + $0x8] sm:$0xff] }
 0x238   : > { %v576_v2 = vadd.f32 %v572_v1, %v571_v0  ;;  %944 = vpow2.f32 %v507_v6 }
 0x239   : > { %946 = vpow2.f32 %v509_v7 }
 0x23c   : > { %v937_v57 = vpop.eup %936 }
 0x23d   : > { %v939_v58 = vpop.eup %938 }
 0x23e   : > { %v535_v60 = vadd.f32 %v939_v58, %v937_v57 }
 0x240   : > { %v941_v61 = vpop.eup %940  ;;  %536 = vadd.xlane.f32.xlu1 %v535_v60 }
 0x241   : > { %v943_v62 = vpop.eup %942 }
 0x242   : > { %v538_v63 = vadd.f32 %v943_v62, %v941_v61  ;;  %v945_v8 = vpop.eup %944 }
 0x243   : > { %v511_v10 = vmul.f32 %v945_v8, %v503_v9  ;;  %v947_v11 = vpop.eup %946 }
 0x244   : > { %539 = vadd.xlane.f32.xlu1 %v538_v63  ;;  %v512_v15 = vmul.f32 %v947_v11, %v504_v13 }
 0x248   : > { %577 = vadd.xlane.f32.xlu1 %v576_v2 }
 0x249   : > { %v575_v4 = vpop.xlane.xlu0 %574 }
 0x24a   : > { %v579_v5 = vadd.f32 %v575_v4, %v567_v3 }
 0x24c   : > { %581 = vst.msk [vmem:[#allocation4] sm:$0xff] %vm543_vm2, %v579_v5 }
 0x2cd   : > { %v537_v12 = vpop.xlane.xlu1 %536 }
 0x2ce   : > { %v541_v14 = vadd.f32 %v537_v12, %v511_v10 }
 0x2d0   : > { %544 = vst.msk [vmem:[#allocation3] sm:$0xff] %vm543_vm2, %v541_v14 }
 0x2d1   : > { %v540_v16 = vpop.xlane.xlu1 %539 }
 0x2d2   : > { %v542_v17 = vadd.f32 %v540_v16, %v512_v15 }
 0x2d4   : > { %545 = vst.msk [vmem:[#allocation3 + $0x8] sm:$0xff] %vm543_vm2, %v542_v17 }
 0x2d5   : > { %v578_v19 = vpop.xlane.xlu1 %577 }
 0x2d6   : > { %v580_v20 = vadd.f32 %v578_v19, %v568_v18 }
 0x2d8   : > { %582 = vst.msk [vmem:[#allocation4 + $0x8] sm:$0xff] %vm543_vm2, %v580_v20 }
 0x2d9 PF: > { %p851_p12 = scmp.ne.s32.totalorder %s1024_s24, 3 }
 0x2da   : > { %v589_v21 = vld [vmem:[#allocation3] sm:$0xff] (!%p851_p12)  ;;  %vm597_vm7 = vcmask (!%p851_p12), 7168   ;;  %v600_v23 = vld [vmem:[#allocation4] sm:$0xff] (!%p851_p12)  ;;  %v588_v29 = vld [vmem:[#allocation2 + $0x8] sm:$0xff] (!%p851_p12) }
 0x2db   : > { %586 = sbr.rel (%p851_p12) target bundleno = 748 (0x2ec), region = 52  ;;  %948 = vlog2.f32 (!%p851_p12), %v589_v21  ;;  %v590_v22 = vld [vmem:[#allocation3 + $0x8] sm:$0xff] (!%p851_p12)  ;;  %602 = vst.msk [vmem:[%s1288_s6] sm:$0xff] (!%p851_p12), %vm597_vm7, %v600_v23  ;;  %v587_v26 = vld [vmem:[#allocation2] sm:$0xff] (!%p851_p12) }
 0x2dc   : > { %950 = vlog2.f32 (!%p851_p12), %v590_v22 }
 0x2df   : > { %v601_v24 = vld [vmem:[#allocation4 + $0x8] sm:$0xff] (!%p851_p12) }
 0x2e0   : > { %603 = vst.msk [vmem:[%s1288_s6 + $0x8] sm:$0xff] (!%p851_p12), %vm597_vm7, %v601_v24 }
 0x2e5   : > { %v949_v25 = vpop.eup %948 }
 0x2e6   : > { %v951_v27 = vpop.eup %950  ;;  %v592_v28 = vmul.f32 0.6931472, %v949_v25 }
 0x2e7   : > { %v594_v30 = vmul.f32 0.6931472, %v951_v27 }
 0x2e8   : > { %v595_v31 = vadd.f32 %v592_v28, %v587_v26 }
 0x2e9   : > { %v596_v32 = vadd.f32 %v594_v30, %v588_v29 }
 0x2ea   : > { %598 = vst.msk [vmem:[%s1287_s5] sm:$0xff] %vm597_vm7, %v595_v31 }
 0x2eb   : > { %599 = vst.msk [vmem:[%s1287_s5 + $0x8] sm:$0xff] %vm597_vm7, %v596_v32 }
 0x2ec PF: > { %p1294_p7 = scmp.ne.s32.totalorder %s1291_s10, 0 }
 0x2ed   : > { %s864_s11 = sshll.u32 (%p1294_p7), %s1024_s24, 3  ;;  %v656_v33 = vld [vmem:[%s1206_s14] sm:$0xff] (%p1294_p7)  ;;  %v658_v34 = vld [vmem:[%s1206_s14 + $0x8] sm:$0xff] (%p1294_p7) }
 0x2ee   : > { %620 = sbr.rel (!%p1294_p7) target bundleno = 757 (0x2f5), region = 56  ;;  %s626_s17 = scalar_lea.vmem (%p1294_p7), %s1286_s4, %s864_s11 }
 0x2ef   : > { %657 = vst [vmem:[%s626_s17] sm:$0xff] (%p1294_p7), %v656_v33  ;;  %659 = vst [vmem:[%s626_s17 + $0x20] sm:$0xff] (%p1294_p7), %v658_v34 }
 0x2f5 PF: > { %s20_s26 = sadd.s32 1, %s1032_s26   ;;  %s1295_s21 = smov %s1016_s22 }
 0x2f6   : > { %p17_p10 = scmp.ge.s32.totalorder %s20_s26, 6   ;;  %s1296_s22 = smov %s1020_s23 }
 0x2f7   : > { %s1297_s23 = smov %s1125_s9  ;;  %s1298_s24 = smov %s1028_s25 }
 0x2f8   : > { %s1299_s25 = smov %s1301_s28  ;;  %19 = sbr.rel (!%p17_p10) target bundleno = 4 (0x4), region = 159 }
 0x2ff   :  { %699 = vsyncpa [#allocation6], 1 }
 0x300   :  { %701 = vsyncpa [#allocation6 + $0x1], 1 }

</bundles_post_ra>
